<compile_context>
chip_gen: v7x
topology: tpu7x:2x2x1
jax: 0.10.0
libtpu: 0.0.40
codegen_flags: <defaults>
</compile_context>

<pallas_src>
import jax
import jax.numpy as jnp
from jax.experimental import pallas as pl
from jax.experimental.pallas import tpu as pltpu


def _round_up(x, m):
    return ((x + m - 1) // m) * m


def q_network_kernel(xT_ref, w1_ref, b1_ref, w2_ref, b2_ref, w3_ref, b3_ref,
                     outT_ref):
    # xT:  (8, TB)   bf16       wN: (out, in) bf16 (PyTorch layout)
    # bN:  (out, 1)  f32        outT: (4, TB) f32
    # fc1 + ReLU  -> (128, TB)
    h1 = jnp.dot(w1_ref[...], xT_ref[...], preferred_element_type=jnp.float32)
    h1 = jnp.maximum(h1 + b1_ref[...], 0.0)
    # fc2 + ReLU  -> (64, TB)
    h2 = jnp.dot(w2_ref[...], h1.astype(jnp.bfloat16),
                 preferred_element_type=jnp.float32)
    h2 = jnp.maximum(h2 + b2_ref[...], 0.0)
    # fc3 (no activation) -> (4, TB), lane-dense store over the batch axis.
    o = jnp.dot(w3_ref[...], h2.astype(jnp.bfloat16),
                preferred_element_type=jnp.float32)
    outT_ref[...] = (o + b3_ref[...]).astype(outT_ref.dtype)


def q_network_forward(x, w1, b1, w2, b2, w3, b3, *, tile_b=1024):
    """x: [B, 8] f32; wN: [out, in], bN: [out] (PyTorch layout) -> [B, 4] f32."""
    B = x.shape[0]

    # Lane (last) dim of the x/out blocks must be a multiple of 128.
    tb = min(tile_b, _round_up(max(B, 1), 128))
    Bp = _round_up(B, tb)

    # bf16 for MXU inputs / the bandwidth-carrying x stream; f32 biases.
    xT = jnp.transpose(x).astype(jnp.bfloat16)                 # (8, B)
    if Bp != B:
        xT = jnp.pad(xT, ((0, 0), (0, Bp - B)))
    w1b, w2b, w3b = (w.astype(jnp.bfloat16) for w in (w1, w2, w3))
    b1c, b2c, b3c = (b.reshape(-1, 1).astype(jnp.float32) for b in (b1, b2, b3))

    grid = (Bp // tb,)
    resident = lambda shape: pl.BlockSpec(shape, lambda i: (0, 0))

    flops = 2 * Bp * (8 * 128 + 128 * 64 + 64 * 4)
    bytes_accessed = Bp * (8 * 2 + 4 * 4) \
        + (8 * 128 + 128 * 64 + 64 * 4) * 2 + (128 + 64 + 4) * 4

    outT = pl.pallas_call(
        q_network_kernel,
        out_shape=jax.ShapeDtypeStruct((4, Bp), jnp.float32),
        grid=grid,
        in_specs=[
            pl.BlockSpec((8, tb), lambda i: (0, i)),    # x^T, tiled over batch
            resident(w1b.shape), resident(b1c.shape),   # weights stay in VMEM
            resident(w2b.shape), resident(b2c.shape),
            resident(w3b.shape), resident(b3c.shape),
        ],
        out_specs=pl.BlockSpec((4, tb), lambda i: (0, i)),
        compiler_params=pltpu.CompilerParams(
            dimension_semantics=("parallel",),          # megacore on v7x
        ),
        cost_estimate=pl.CostEstimate(
            flops=flops, transcendentals=0, bytes_accessed=bytes_accessed),
    )(xT, w1b, b1c, w2b, b2c, w3b, b3c)

    return jnp.transpose(outT[:, :B])                   # (B, 4)


def init_params(key):
    """Deterministic PyTorch-style init; weights in PyTorch [out, in] layout."""
    def linear(key, fan_in, fan_out):
        kw, kb = jax.random.split(key)
        bound = 1.0 / jnp.sqrt(fan_in)
        w = jax.random.uniform(kw, (fan_out, fan_in), jnp.float32, -bound, bound)
        b = jax.random.uniform(kb, (fan_out,), jnp.float32, -bound, bound)
        return w, b

    k1, k2, k3 = jax.random.split(key, 3)
    w1, b1 = linear(k1, 8, 128)
    w2, b2 = linear(k2, 128, 64)
    w3, b3 = linear(k3, 64, 4)
    return w1, b1, w2, b2, w3, b3


if __name__ == "__main__":
    key = jax.random.PRNGKey(0)
    k_params, k_x = jax.random.split(key)

    w1, b1, w2, b2, w3, b3 = init_params(k_params)
    x = jax.random.normal(k_x, (8, 8), jnp.float32)     # batch=8, state_dim=8

    out = q_network_forward(x, w1, b1, w2, b2, w3, b3)
    out = jax.block_until_ready(out)

    # Reference (PyTorch forward semantics) in full f32; the kernel uses bf16
    # inputs with f32 accumulation, so compare with a bf16-appropriate tolerance.
    ref = jnp.maximum(x @ w1.T + b1, 0.0)
    ref = jnp.maximum(ref @ w2.T + b2, 0.0)
    ref = ref @ w3.T + b3

    assert out.shape == (8, 4)
    assert jnp.allclose(out, ref, atol=5e-2, rtol=5e-2), (out, ref)

    print("KERNEL_OK")
</pallas_src>

<mosaic_0001>
module attributes {stable_mosaic.version = 11 : i64} {
  func.func @q_network_kernel(%arg0: i32, %arg1: memref<8x128xbf16, #tpu.memory_space<vmem>>, %arg2: memref<128x8xbf16, #tpu.memory_space<vmem>>, %arg3: memref<128x1xf32, #tpu.memory_space<vmem>>, %arg4: memref<64x128xbf16, #tpu.memory_space<vmem>>, %arg5: memref<64x1xf32, #tpu.memory_space<vmem>>, %arg6: memref<4x64xbf16, #tpu.memory_space<vmem>>, %arg7: memref<4x1xf32, #tpu.memory_space<vmem>>, %arg8: memref<4x128xf32, #tpu.memory_space<vmem>>) attributes {dimension_semantics = [#tpu.dimension_semantics<parallel>], iteration_bounds = array<i64: 1>, scalar_prefetch = 0 : i64, scratch_operands = 0 : i64, tpu.core_type = #tpu.core_type<tc>, window_params = [{transform_indices = @transform_0, window_bounds = array<i64: 8, 128>}, {pipeline_mode = #tpu.pipeline_mode<synchronous>, transform_indices = @transform_1, window_bounds = array<i64: 128, 8>}, {pipeline_mode = #tpu.pipeline_mode<synchronous>, transform_indices = @transform_2, window_bounds = array<i64: 128, 1>}, {pipeline_mode = #tpu.pipeline_mode<synchronous>, transform_indices = @transform_3, window_bounds = array<i64: 64, 128>}, {pipeline_mode = #tpu.pipeline_mode<synchronous>, transform_indices = @transform_4, window_bounds = array<i64: 64, 1>}, {pipeline_mode = #tpu.pipeline_mode<synchronous>, transform_indices = @transform_5, window_bounds = array<i64: 4, 64>}, {pipeline_mode = #tpu.pipeline_mode<synchronous>, transform_indices = @transform_6, window_bounds = array<i64: 4, 1>}, {transform_indices = @transform_7, window_bounds = array<i64: 4, 128>}]} {
    %c0 = arith.constant 0 : index
    %c0_0 = arith.constant 0 : index
    %0 = vector.load %arg2[%c0, %c0_0] : memref<128x8xbf16, #tpu.memory_space<vmem>>, vector<128x8xbf16>
    %c0_1 = arith.constant 0 : index
    %c0_2 = arith.constant 0 : index
    %1 = vector.load %arg1[%c0_1, %c0_2] : memref<8x128xbf16, #tpu.memory_space<vmem>>, vector<8x128xbf16>
    %cst = arith.constant dense<0.000000e+00> : vector<128x128xf32>
    %2 = tpu.matmul %0, %1, %cst {dimension_numbers = #tpu.dot_dimension_numbers<[1], [0], [0], [1], [0, 0, 1, 1], [], []>} : vector<128x8xbf16>, vector<8x128xbf16>, vector<128x128xf32> -> vector<128x128xf32>
    %c0_3 = arith.constant 0 : index
    %c0_4 = arith.constant 0 : index
    %3 = vector.load %arg3[%c0_3, %c0_4] : memref<128x1xf32, #tpu.memory_space<vmem>>, vector<128x1xf32>
    %4 = vector.broadcast %3 : vector<128x1xf32> to vector<128x128xf32>
    %5 = arith.addf %2, %4 : vector<128x128xf32>
    %cst_5 = arith.constant 0.000000e+00 : f32
    %6 = vector.broadcast %cst_5 : f32 to vector<128x128xf32>
    %7 = arith.maximumf %5, %6 : vector<128x128xf32>
    %c0_6 = arith.constant 0 : index
    %c0_7 = arith.constant 0 : index
    %8 = vector.load %arg4[%c0_6, %c0_7] : memref<64x128xbf16, #tpu.memory_space<vmem>>, vector<64x128xbf16>
    %9 = arith.truncf %7 : vector<128x128xf32> to vector<128x128xbf16>
    %cst_8 = arith.constant dense<0.000000e+00> : vector<64x128xf32>
    %10 = tpu.matmul %8, %9, %cst_8 {dimension_numbers = #tpu.dot_dimension_numbers<[1], [0], [0], [1], [0, 0, 1, 1], [], []>} : vector<64x128xbf16>, vector<128x128xbf16>, vector<64x128xf32> -> vector<64x128xf32>
    %c0_9 = arith.constant 0 : index
    %c0_10 = arith.constant 0 : index
    %11 = vector.load %arg5[%c0_9, %c0_10] : memref<64x1xf32, #tpu.memory_space<vmem>>, vector<64x1xf32>
    %12 = vector.broadcast %11 : vector<64x1xf32> to vector<64x128xf32>
    %13 = arith.addf %10, %12 : vector<64x128xf32>
    %cst_11 = arith.constant 0.000000e+00 : f32
    %14 = vector.broadcast %cst_11 : f32 to vector<64x128xf32>
    %15 = arith.maximumf %13, %14 : vector<64x128xf32>
    %c0_12 = arith.constant 0 : index
    %c0_13 = arith.constant 0 : index
    %16 = vector.load %arg6[%c0_12, %c0_13] : memref<4x64xbf16, #tpu.memory_space<vmem>>, vector<4x64xbf16>
    %17 = arith.truncf %15 : vector<64x128xf32> to vector<64x128xbf16>
    %cst_14 = arith.constant dense<0.000000e+00> : vector<4x128xf32>
    %18 = tpu.matmul %16, %17, %cst_14 {dimension_numbers = #tpu.dot_dimension_numbers<[1], [0], [0], [1], [0, 0, 1, 1], [], []>} : vector<4x64xbf16>, vector<64x128xbf16>, vector<4x128xf32> -> vector<4x128xf32>
    %c0_15 = arith.constant 0 : index
    %c0_16 = arith.constant 0 : index
    %19 = vector.load %arg7[%c0_15, %c0_16] : memref<4x1xf32, #tpu.memory_space<vmem>>, vector<4x1xf32>
    %20 = vector.broadcast %19 : vector<4x1xf32> to vector<4x128xf32>
    %21 = arith.addf %18, %20 : vector<4x128xf32>
    %c0_17 = arith.constant 0 : index
    %c0_18 = arith.constant 0 : index
    %22 = vector.load %arg8[%c0_17, %c0_18] : memref<4x128xf32, #tpu.memory_space<vmem>>, vector<4x128xf32>
    tpu.vector_store %arg8[%c0_17, %c0_18], %21 {strides = array<i32>} : memref<4x128xf32, #tpu.memory_space<vmem>>, vector<4x128xf32>,
    return
  }
  func.func @transform_0(%arg0: i32) -> (i32, i32) {
    %c0_i32 = arith.constant 0 : i32
    %c0_i32_0 = arith.constant 0 : i32
    return %c0_i32, %arg0 : i32, i32
  }
  func.func @transform_1(%arg0: i32) -> (i32, i32) {
    %c0_i32 = arith.constant 0 : i32
    %c0_i32_0 = arith.constant 0 : i32
    %c0_i32_1 = arith.constant 0 : i32
    return %c0_i32, %c0_i32_0 : i32, i32
  }
  func.func @transform_2(%arg0: i32) -> (i32, i32) {
    %c0_i32 = arith.constant 0 : i32
    %c0_i32_0 = arith.constant 0 : i32
    %c0_i32_1 = arith.constant 0 : i32
    return %c0_i32, %c0_i32_0 : i32, i32
  }
  func.func @transform_3(%arg0: i32) -> (i32, i32) {
    %c0_i32 = arith.constant 0 : i32
    %c0_i32_0 = arith.constant 0 : i32
    %c0_i32_1 = arith.constant 0 : i32
    return %c0_i32, %c0_i32_0 : i32, i32
  }
  func.func @transform_4(%arg0: i32) -> (i32, i32) {
    %c0_i32 = arith.constant 0 : i32
    %c0_i32_0 = arith.constant 0 : i32
    %c0_i32_1 = arith.constant 0 : i32
    return %c0_i32, %c0_i32_0 : i32, i32
  }
  func.func @transform_5(%arg0: i32) -> (i32, i32) {
    %c0_i32 = arith.constant 0 : i32
    %c0_i32_0 = arith.constant 0 : i32
    %c0_i32_1 = arith.constant 0 : i32
    return %c0_i32, %c0_i32_0 : i32, i32
  }
  func.func @transform_6(%arg0: i32) -> (i32, i32) {
    %c0_i32 = arith.constant 0 : i32
    %c0_i32_0 = arith.constant 0 : i32
    %c0_i32_1 = arith.constant 0 : i32
    return %c0_i32, %c0_i32_0 : i32, i32
  }
  func.func @transform_7(%arg0: i32) -> (i32, i32) {
    %c0_i32 = arith.constant 0 : i32
    %c0_i32_0 = arith.constant 0 : i32
    return %c0_i32, %arg0 : i32, i32
  }
}

</mosaic_0001>

<bundles_post_ra>
// kernel: tpu_custom_call.1
= control target key start
LH: loop header
LB: loop body
LE: loop exit
PB: predicated region body
PF: predicated region fallthrough
CT: control target
= control target key end

     0   :  { %vm206_vm0 = vcmask 1043456   ;;  %vm181_vm1 = vcmask 64512   ;;  %v698_v5 = vmov 0   ;;  %s879_s0 = inlined_call_operand.vmem [shape: bf16[8,128], index: 0, kind: input, shape index: {}]   ;;  %s880_s1 = inlined_call_operand.vmem [shape: bf16[128,8], index: 1, kind: input, shape index: {}]   ;;  %s881_s2 = inlined_call_operand.vmem [shape: f32[128,1], index: 2, kind: input, shape index: {}]   ;;  %s882_s3 = inlined_call_operand.vmem [shape: bf16[64,128], index: 3, kind: input, shape index: {}]   ;;  %s883_s4 = inlined_call_operand.vmem [shape: f32[64,1], index: 4, kind: input, shape index: {}]   ;;  %s884_s5 = inlined_call_operand.vmem [shape: bf16[4,64], index: 5, kind: input, shape index: {}]   ;;  %s885_s6 = inlined_call_operand.vmem [shape: f32[4,1], index: 6, kind: input, shape index: {}]   ;;  %s886_s7 = inlined_call_operand.hbm [shape: f32[4,128], index: 7, kind: output, shape index: {}]  }
   0x1   :  { %v44_v0 = vld [vmem:[%s879_s0] sm:$0xf]  ;;  %v663_v3 = vld [vmem:[%s880_s1 + $0x8] sm:$0xff]   ;;  %v664_v4 = vld [vmem:[%s880_s1 + $0x10] sm:$0xff]   ;;  %660 = vset.pattern.permute.xlu0 %v698_v5  ;;  %661 = vset.pattern.permute.xlu1 %v698_v5 }
   0x2   :  { %v662_v1 = vld [vmem:[%s880_s1] sm:$0xff]   ;;  %655 = vmatprep.subr.msk.bf16.mxu0 %vm206_vm0, %v44_v0  ;;  %v208_v2 = vsel %vm206_vm0, %v44_v0, 0  ;;  %v665_v7 = vld [vmem:[%s880_s1 + $0x18] sm:$0xff]   ;;  %v47_v8 = vld [vmem:[%s881_s2 + $0x10] sm:$0xff] }
   0x3   :  { %602 = vmatpush3.bf16.msra.mxu0 %v208_v2  ;;  %603 = vmatprep.mubr.msk.bf16.mxu0 %vm181_vm1, %v662_v1  ;;  %v45_v6 = vld [vmem:[%s881_s2] sm:$0xff]  ;;  %v46_v10 = vld [vmem:[%s881_s2 + $0x8] sm:$0xff]  ;;  %v48_v11 = vld [vmem:[%s881_s2 + $0x18] sm:$0xff] }
   0x4   :  { %63 = vperm.xlu0 %660, %v45_v6   ;;  %v666_v9 = vld [vmem:[%s880_s1 + $0x20] sm:$0xff]   ;;  %73 = vperm.xlu1 %661, %v47_v8   ;;  %v50_v13 = vld [vmem:[%s881_s2 + $0x28] sm:$0xff]  ;;  %v668_v15 = vld [vmem:[%s880_s1 + $0x30] sm:$0xff]  }
   0x5   :  { %v49_v12 = vld [vmem:[%s881_s2 + $0x20] sm:$0xff]  ;;  %v667_v14 = vld [vmem:[%s880_s1 + $0x28] sm:$0xff]   ;;  %v51_v16 = vld [vmem:[%s881_s2 + $0x30] sm:$0xff] }
   0x6   :  { %604 = vmatmul.mubr.msk.bf16.vlgmr.msra.gmra.mrb[0].mxu0 %vm181_vm1, %v663_v3  ;;  %v52_v17 = vld [vmem:[%s881_s2 + $0x38] sm:$0xff] }
   0x7   :  { %607 = vmatprep.mubr.msk.bf16.mxu0 %vm181_vm1, %v664_v4 }
   0x8   :  { %68 = vperm.xlu0 %660, %v46_v10   ;;  %78 = vperm.xlu1 %661, %v48_v11  }
   0xc   :  { %83 = vperm.xlu0 %660, %v49_v12   ;;  %88 = vperm.xlu1 %661, %v50_v13  }
   0xe   :  { %608 = vmatmul.mubr.msk.bf16.gmra.mrb[4].mxu0 %vm181_vm1, %v665_v7 }
   0xf   :  { %611 = vmatprep.mubr.msk.bf16.mxu0 %vm181_vm1, %v666_v9 }
  0x10   :  { %12 = vsyncpa [#allocation3], 0  ;;  %93 = vperm.xlu0 %660, %v51_v16   ;;  %v53_v18 = vld [vmem:[%s881_s2 + $0x40] sm:$0xff]  ;;  %98 = vperm.xlu1 %661, %v52_v17   ;;  %v54_v19 = vld [vmem:[%s881_s2 + $0x48] sm:$0xff]  ;;  %vm700_vm2 = vmmov 0   ;;  %vm495_vm3 = vcmask 523264  }
  0x11   :  { %v669_v20 = vld [vmem:[%s880_s1 + $0x38] sm:$0xff]   ;;  %v55_v21 = vld [vmem:[%s881_s2 + $0x50] sm:$0xff]  ;;  %v57_v23 = vld [vmem:[%s881_s2 + $0x60] sm:$0xff]  ;;  %s701_s24 = smov [#allocation2]  }
  0x12   :  { %v56_v22 = vld [vmem:[%s881_s2 + $0x58] sm:$0xff]  ;;  %v58_v24 = vld [vmem:[%s881_s2 + $0x68] sm:$0xff]  ;;  %v59_v25 = vld [vmem:[%s881_s2 + $0x70] sm:$0xff]  ;;  %s546_s25 = sshll.u32 %s701_s24, 4  ;;  %s547_s25 = int_to_ptr.vmem [resolvable:$true] %s546_s25 }
  0x13   :  { %v60_v26 = vld [vmem:[%s881_s2 + $0x78] sm:$0xff]  ;;  %v339_v27 = vld [vmem:[%s883_s4] sm:$0xff]  ;;  %v340_v28 = vld [vmem:[%s883_s4 + $0x8] sm:$0xff]  ;;  %s674_s26 = scalar_lea.vmem %s547_s25, 64  ;;  %p679_p1 = scmp.lt.s32.totalorder %s547_s25, %s547_s25 }
  0x14   :  { %103 = vperm.xlu0 %660, %v53_v18   ;;  %108 = vperm.xlu1 %661, %v54_v19   ;;  %v341_v29 = vld [vmem:[%s883_s4 + $0x10] sm:$0xff]  ;;  %v342_v30 = vld [vmem:[%s883_s4 + $0x18] sm:$0xff]  ;;  %v343_v31 = vld [vmem:[%s883_s4 + $0x20] sm:$0xff]  ;;  %p675_p0 = scmp.ne.s32.totalorder %s547_s25, %s674_s26  ;;  %p680_p2 = scmp.lt.s32.totalorder %s674_s26, %s674_s26 }
  0x15   :  { %v344_v32 = vld [vmem:[%s883_s4 + $0x28] sm:$0xff]  ;;  %v345_v33 = vld [vmem:[%s883_s4 + $0x30] sm:$0xff]  ;;  %v346_v34 = vld [vmem:[%s883_s4 + $0x38] sm:$0xff] }
  0x16   :  { %612 = vmatmul.mubr.msk.bf16.gmra.mrb[8].mxu0 %vm181_vm1, %v667_v14  ;;  %v489_v35 = vld [vmem:[%s885_s6] sm:$0xf]  ;;  %p681_p3 = por %p680_p2, %p679_p1 }
  0x17   :  { %615 = vmatprep.mubr.msk.bf16.mxu0 %vm181_vm1, %v668_v15  ;;  %v670_v36 = vld [vmem:[%s882_s3] sm:$0xff]  }
  0x18   :  { %113 = vperm.xlu0 %660, %v55_v21   ;;  %118 = vperm.xlu1 %661, %v56_v22   ;;  %p682_p4 = pnand %p681_p3, %p675_p0 }
  0x19   :  { %635 = vmatprep.mubr.bf16.mxu1 %v670_v36 }
  0x1c   :  { %123 = vperm.xlu0 %660, %v57_v23   ;;  %128 = vperm.xlu1 %661, %v58_v24  }
  0x1e   :  { %616 = vmatmul.mubr.msk.bf16.gmra.mrb[12].mxu0 %vm181_vm1, %v669_v20 }
  0x20   :  { %133 = vperm.xlu0 %660, %v59_v25   ;;  %138 = vperm.xlu1 %661, %v60_v26  }
  0x24   :  { %349 = vperm.xlu0 %660, %v339_v27   ;;  %354 = vperm.xlu1 %661, %v340_v28  }
  0x28   :  { %359 = vperm.xlu0 %660, %v341_v29   ;;  %364 = vperm.xlu1 %661, %v342_v30  }
  0x2c   :  { %369 = vperm.xlu0 %660, %v343_v31   ;;  %374 = vperm.xlu1 %661, %v344_v32  }
  0x30   :  { %379 = vperm.xlu0 %660, %v345_v33   ;;  %384 = vperm.xlu1 %661, %v346_v34  }
  0x34   :  { %492 = vperm.xlu0 %660, %v489_v35  }
  0x83   :  { %v64_v37 = vpop.permute.xlu0 %63  ;;  %v74_v38 = vpop.permute.xlu1 %73 }
  0x87   :  { %v69_v39 = vpop.permute.xlu0 %68  ;;  %v79_v40 = vpop.permute.xlu1 %78 }
  0x8b   :  { %v84_v41 = vpop.permute.xlu0 %83  ;;  %v89_v42 = vpop.permute.xlu1 %88 }
  0x8f   :  { %v94_v43 = vpop.permute.xlu0 %93  ;;  %v99_v47 = vpop.permute.xlu1 %98 }
  0x93   :  { %v104_v55 = vpop.permute.xlu0 %103  ;;  %v109_v59 = vpop.permute.xlu1 %108 }
  0x97   :  { %v114_v4 = vpop.permute.xlu0 %113  ;;  %v119_v8 = vpop.permute.xlu1 %118 }
  0x9b   :  { %v124_v16 = vpop.permute.xlu0 %123  ;;  %v129_v21 = vpop.permute.xlu1 %128 }
  0x9f   :  { %v134_v28 = vpop.permute.xlu0 %133  ;;  %v139_v33 = vpop.permute.xlu1 %138 }
  0xd9   :  { %v605_v44 = vpop.f32.mrb[0].mxu0 }
  0xda   :  { %v253_v45 = vadd.f32 %v605_v44, %v74_v38  ;;  %v244_v46 = vpop.f32.mrb[1].mxu0 }
  0xdb   :  { %v245_v48 = vadd.f32 %v244_v46, %v64_v37  ;;  %v606_v49 = vpop.f32.mrb[2].mxu0  ;;  %v672_v46 = vld [vmem:[%s882_s3 + $0x10] sm:$0xff]  }
  0xdc   :  { %v256_v50 = vadd.f32 %v606_v49, %v79_v40  ;;  %v247_v51 = vpop.f32.mrb[3].mxu0  ;;  %v309_v53 = vmax.f32 %v253_v45, 0.0  ;;  %v671_v45 = vld [vmem:[%s882_s3 + $0x8] sm:$0xff]   ;;  %v350_v49 = vpop.permute.xlu0 %349 }
  0xdd   :  { %v248_v52 = vadd.f32 %v247_v51, %v69_v39  ;;  %v307_v56 = vmax.f32 %v245_v48, 0.0  ;;  %v699_v48 = vmov 0.0  }
  0xde   :  { %v310_v54 = vmax.f32 %v256_v50, 0.0  ;;  %643 = vmatprep.subr.bf16.mxu0 %v699_v48  ;;  %651 = vmatprep.mubr.msk.bf16.mxu0 %vm700_vm2, %v699_v48  ;;  %v355_v50 = vpop.permute.xlu1 %354 }
  0xdf   :  { %v308_v57 = vmax.f32 %v248_v52, 0.0 }
  0xe0   :  { %v332_v58 = vpack.c.bf16 %v310_v54, %v309_v53  ;;  %v360_v51 = vpop.permute.xlu0 %359 }
  0xe1   :  { %v609_v60 = vpop.f32.mrb[4].mxu0  ;;  %v331_v61 = vpack.c.bf16 %v308_v57, %v307_v56 }
  0xe2   :  { %v269_v62 = vadd.f32 %v609_v60, %v94_v43  ;;  %v260_v63 = vpop.f32.mrb[5].mxu0  ;;  %v365_v52 = vpop.permute.xlu1 %364 }
  0xe3   :  { %v261_v0 = vadd.f32 %v260_v63, %v84_v41  ;;  %v610_v1 = vpop.f32.mrb[6].mxu0  ;;  %619 = vmatprep.subr.bf16.mxu1 %v331_v61 }
  0xe4   :  { %v272_v2 = vadd.f32 %v610_v1, %v99_v47  ;;  %v263_v3 = vpop.f32.mrb[7].mxu0  ;;  %620 = vmatpush3.bf16.msra.mxu1 %v331_v61  ;;  %v313_v6 = vmax.f32 %v269_v62, 0.0  ;;  %v673_v47 = vld [vmem:[%s882_s3 + $0x18] sm:$0xff]   ;;  %v370_v56 = vpop.permute.xlu0 %369 }
  0xe5   :  { %v264_v5 = vadd.f32 %v263_v3, %v89_v42  ;;  %621 = vmatprep.subr.bf16.mxu1 %v332_v58  ;;  %v311_v9 = vmax.f32 %v261_v0, 0.0 }
  0xe6   :  { %v314_v7 = vmax.f32 %v272_v2, 0.0  ;;  %v375_v61 = vpop.permute.xlu1 %374 }
  0xe7   :  { %v312_v10 = vmax.f32 %v264_v5, 0.0 }
  0xe8   :  { %v334_v11 = vpack.c.bf16 %v314_v7, %v313_v6  ;;  %622 = vmatpush3.bf16.msra.mxu1 %v332_v58 }
  0xe9   :  { %v333_v12 = vpack.c.bf16 %v312_v10, %v311_v9  ;;  %v613_v13 = vpop.f32.mrb[8].mxu0 }
  0xea   :  { %v285_v14 = vadd.f32 %v613_v13, %v114_v4  ;;  %v276_v15 = vpop.f32.mrb[9].mxu0  ;;  %v380_v4 = vpop.permute.xlu0 %379 }
  0xeb   :  { %v277_v17 = vadd.f32 %v276_v15, %v104_v55  ;;  %v614_v18 = vpop.f32.mrb[10].mxu0  ;;  %623 = vmatprep.subr.bf16.mxu1 %v333_v12  ;;  %v385_v9 = vpop.permute.xlu1 %384 }
  0xec   :  { %v288_v19 = vadd.f32 %v614_v18, %v119_v8  ;;  %v279_v20 = vpop.f32.mrb[11].mxu0  ;;  %624 = vmatpush3.bf16.msra.mxu1 %v333_v12  ;;  %v317_v23 = vmax.f32 %v285_v14, 0.0 }
  0xed   :  { %v280_v22 = vadd.f32 %v279_v20, %v109_v59  ;;  %625 = vmatprep.subr.bf16.mxu1 %v334_v11  ;;  %v315_v25 = vmax.f32 %v277_v17, 0.0 }
  0xee   :  { %v318_v24 = vmax.f32 %v288_v19, 0.0 }
  0xef   :  { %v316_v26 = vmax.f32 %v280_v22, 0.0  ;;  %v493_v22 = vpop.permute.xlu0 %492 }
  0xf0   :  { %v336_v27 = vpack.c.bf16 %v318_v24, %v317_v23  ;;  %626 = vmatpush3.bf16.msra.mxu1 %v334_v11 }
  0xf1   :  { %v335_v29 = vpack.c.bf16 %v316_v26, %v315_v25  ;;  %v617_v30 = vpop.f32.mrb[12].mxu0 }
  0xf2   :  { %v301_v31 = vadd.f32 %v617_v30, %v134_v28  ;;  %v292_v32 = vpop.f32.mrb[13].mxu0 }
  0xf3   :  { %v293_v34 = vadd.f32 %v292_v32, %v124_v16  ;;  %v618_v35 = vpop.f32.mrb[14].mxu0  ;;  %627 = vmatprep.subr.bf16.mxu1 %v335_v29 }
  0xf4   :  { %v304_v36 = vadd.f32 %v618_v35, %v139_v33  ;;  %v295_v37 = vpop.f32.mrb[15].mxu0  ;;  %628 = vmatpush3.bf16.msra.mxu1 %v335_v29  ;;  %v321_v39 = vmax.f32 %v301_v31, 0.0 }
  0xf5   :  { %v296_v38 = vadd.f32 %v295_v37, %v129_v21  ;;  %629 = vmatprep.subr.bf16.mxu1 %v336_v27  ;;  %v319_v41 = vmax.f32 %v293_v34, 0.0  ;;  %v484_v21 = vld [vmem:[%s884_s5] sm:$0x3] }
  0xf6   :  { %v322_v40 = vmax.f32 %v304_v36, 0.0 }
  0xf7   :  { %v320_v42 = vmax.f32 %v296_v38, 0.0 }
  0xf8   :  { %v338_v43 = vpack.c.bf16 %v322_v40, %v321_v39  ;;  %630 = vmatpush3.bf16.msra.mxu1 %v336_v27 }
  0xf9   :  { %v337_v44 = vpack.c.bf16 %v320_v42, %v319_v41 }
  0xfb   :  { %631 = vmatprep.subr.bf16.mxu1 %v337_v44 }
  0xfc   :  { %632 = vmatpush3.bf16.msra.mxu1 %v337_v44 }
  0xfd   :  { %633 = vmatprep.subr.bf16.mxu1 %v338_v43 }
 0x100   :  { %634 = vmatpush3.bf16.msra.mxu1 %v338_v43 }
 0x103   :  { %636 = vmatmul.mubr.bf16.vlgmr.msra.gmra.mrb[0].mxu1 %v671_v45 }
 0x104   :  { %639 = vmatprep.mubr.bf16.mxu1 %v672_v46 }
 0x10b   :  { %640 = vmatmul.mubr.bf16.gmra.mrb[4].mxu1 %v673_v47 }
 0x1d6   :  { %v637_v53 = vpop.f32.mrb[0].mxu1 }
 0x1d7   :  { %v454_v54 = vadd.f32 %v637_v53, %v360_v51  ;;  %v445_v55 = vpop.f32.mrb[1].mxu1 }
 0x1d8   :  { %v446_v57 = vadd.f32 %v445_v55, %v350_v49  ;;  %v638_v58 = vpop.f32.mrb[2].mxu1 }
 0x1d9   :  { %v457_v59 = vadd.f32 %v638_v58, %v365_v52  ;;  %v448_v60 = vpop.f32.mrb[3].mxu1  ;;  %v478_v63 = vmax.f32 %v454_v54, 0.0 }
 0x1da   :  { %v449_v62 = vadd.f32 %v448_v60, %v355_v50  ;;  %v476_v1 = vmax.f32 %v446_v57, 0.0 }
 0x1db   :  { %v479_v0 = vmax.f32 %v457_v59, 0.0 }
 0x1dc   :  { %v477_v2 = vmax.f32 %v449_v62, 0.0 }
 0x1dd   :  { %v486_v3 = vpack.c.bf16 %v479_v0, %v478_v63 }
 0x1de   :  { %v485_v5 = vpack.c.bf16 %v477_v2, %v476_v1  ;;  %v641_v6 = vpop.f32.mrb[4].mxu1 }
 0x1df   :  { %v470_v7 = vadd.f32 %v641_v6, %v380_v4  ;;  %v461_v8 = vpop.f32.mrb[5].mxu1 }
 0x1e0   :  { %v462_v10 = vadd.f32 %v461_v8, %v370_v56  ;;  %v642_v11 = vpop.f32.mrb[6].mxu1  ;;  %644 = vmatpush3.bf16.msra.mxu0 %v485_v5 }
 0x1e1   :  { %v473_v12 = vadd.f32 %v642_v11, %v385_v9  ;;  %v464_v13 = vpop.f32.mrb[7].mxu1  ;;  %645 = vmatprep.subr.bf16.mxu0 %v699_v48  ;;  %v482_v15 = vmax.f32 %v470_v7, 0.0 }
 0x1e2   :  { %v465_v14 = vadd.f32 %v464_v13, %v375_v61  ;;  %v480_v17 = vmax.f32 %v462_v10, 0.0 }
 0x1e3   :  { %v483_v16 = vmax.f32 %v473_v12, 0.0 }
 0x1e4   :  { %v481_v18 = vmax.f32 %v465_v14, 0.0  ;;  %646 = vmatpush3.bf16.msra.mxu0 %v486_v3 }
 0x1e5   :  { %v488_v19 = vpack.c.bf16 %v483_v16, %v482_v15  ;;  %647 = vmatprep.subr.bf16.mxu0 %v699_v48 }
 0x1e6   :  { %v487_v20 = vpack.c.bf16 %v481_v18, %v480_v17 }
 0x1e8   :  { %648 = vmatpush3.bf16.msra.mxu0 %v487_v20 }
 0x1e9   :  { %649 = vmatprep.subr.bf16.mxu0 %v699_v48 }
 0x1ec   :  { %650 = vmatpush3.bf16.msra.mxu0 %v488_v19 }
 0x1ef   :  { %652 = vmatmul.mubr.msk.bf16.vlgmr.msra.gmra.mrb[16].mxu0 %vm495_vm3, %v484_v21 }
 0x2c2   :  { %v533_v23 = vpop.f32.mrb[16].mxu0 }
 0x2c3   :  { %v534_v24 = vadd.f32 %v533_v23, %v493_v22  ;;  %v653_v25 = vpop.f32.mrb[17].mxu0 }
 0x2c4   :  { %v536_v26 = vpop.f32.mrb[18].mxu0 }
 0x2c5   :  { %539 = vst [vmem:[#allocation2] sm:$0xf] %v534_v24  ;;  %v654_v27 = vpop.f32.mrb[19].mxu0 }
 0x2c6   :  { %685 = shalt.err (!%p682_p4)
}
 0x2c7   :  { %s686_s28 = scalar_lea.hbm %s886_s7, 64 }
 0x2c8   :  { %p687_p5 = scmp.ne.s32.totalorder %s886_s7, %s686_s28  ;;  %p690_p6 = scmp.lt.u32.totalorder %s686_s28, %s886_s7 }
 0x2ca   :  { %p692_p7 = pnand %p690_p6, %p687_p5 }
 0x2cc   :  { %695 = shalt.err (!%p692_p7)
}
 0x2cd   :  { %549 = dma.vmem_to_hbm [thread:$0]  %s547_s25, 64, %s886_s7, [#allocation3]  }
 0x2ce   :  { %696 = dma.done.wait [#allocation3], 64  }
 0x2cf   :  { %697 = vsyncadd [#allocation3], 4294967232 }
 0x2d0   :  { %553 = vsyncpa [#allocation3], 1 }

</bundles_post_ra>
